<compile_context>
chip_gen: v7x
topology: tpu7x:2x2x1
jax: 0.10.0
libtpu: 0.0.40
codegen_flags: <defaults>
</compile_context>

<pallas_src>
import jax
import jax.numpy as jnp
from jax.experimental import pallas as pl
from jax.experimental.pallas import tpu as pltpu

LANE, SUB = 128, 8


def actor_critic_kernel(
    x_ref,    # [TB, IN]       f32 observations (cast to compute dtype in-kernel)
    w1_ref,   # [IN, FC1P]     compute dtype (f32 or bf16)
    b1_ref,   # [1,  FC1P]     f32
    w2_ref,   # [FC1P, FC2P]   compute dtype
    b2_ref,   # [1,  FC2P]     f32
    wh_ref,   # [FC2P, HEADP]  compute dtype (fused actor+critic weights)
    bh_ref,   # [1,  HEADP]    f32          (fused actor+critic bias)
    out_ref,  # [TB, OUTW]     f32 output (policy logits | value), OUTW <= HEADP
):
    cdt = w1_ref.dtype                 # matmul-operand (compute) dtype
    x = x_ref[...].astype(cdt)         # VPU cast hides under DMA

    # fc1 + ReLU (accumulate in f32, elementwise in f32, cast only for next MXU op)
    h1 = jnp.dot(x, w1_ref[...], preferred_element_type=jnp.float32)
    h1 = jnp.maximum(h1 + b1_ref[...], 0.0).astype(cdt)

    # fc2 + ReLU
    h2 = jnp.dot(h1, w2_ref[...], preferred_element_type=jnp.float32)
    h2 = jnp.maximum(h2 + b2_ref[...], 0.0).astype(cdt)

    # fused actor+critic head: single lane-dense matmul, no activation.
    out = jnp.dot(h2, wh_ref[...], preferred_element_type=jnp.float32) + bh_ref[...]
    # Output block may be narrower than the lane-padded head (true width NA+1).
    out_ref[...] = out[:, : out_ref.shape[1]].astype(out_ref.dtype)


def _round_up(n, m):
    return ((n + m - 1) // m) * m


def _pad2d(a, rows, cols):
    return jnp.pad(a, ((0, rows - a.shape[0]), (0, cols - a.shape[1])))


def prepare_params(params, param_dtype=jnp.bfloat16):
    """One-time parameter prep (do after each weight update, not per forward):
    fuse actor/critic heads, zero-pad feature dims to 128 lanes, cast matmul
    operands to `param_dtype` (biases stay f32 — added post-accumulation)."""
    IN, FC1 = params["w1"].shape
    FC2 = params["w2"].shape[1]
    NA = params["wa"].shape[1]
    HEAD = NA + 1

    FC1P = _round_up(FC1, LANE)
    FC2P = _round_up(FC2, LANE)
    HEADP = _round_up(HEAD, LANE)

    wh = jnp.concatenate([params["wa"], params["wc"]], axis=1)
    bh = jnp.concatenate([params["ba"], params["bc"]], axis=1)

    return dict(
        w1=_pad2d(params["w1"], IN, FC1P).astype(param_dtype),
        b1=_pad2d(params["b1"], 1, FC1P).astype(jnp.float32),
        w2=_pad2d(params["w2"], FC1P, FC2P).astype(param_dtype),
        b2=_pad2d(params["b2"], 1, FC2P).astype(jnp.float32),
        wh=_pad2d(wh, FC2P, HEADP).astype(param_dtype),
        bh=_pad2d(bh, 1, HEADP).astype(jnp.float32),
        n_actions=NA,
    )


def _build_pallas_call(TB, n_tiles, IN, FC1P, FC2P, HEADP, OUTW, BP,
                       single_buffer_weights):
    def const_spec(shape):
        # Weights/biases are VMEM-resident across all grid steps (constant
        # index_map); single-buffering halves their VMEM footprint.
        if single_buffer_weights:
            return pl.BlockSpec(shape, lambda i: (0, 0),
                                pipeline_mode=pl.Buffered(1))
        return pl.BlockSpec(shape, lambda i: (0, 0))

    in_specs = [
        pl.BlockSpec((TB, IN), lambda i: (i, 0)),    # x: tiled over batch, true IN width
        const_spec((IN, FC1P)),
        const_spec((1, FC1P)),
        const_spec((FC1P, FC2P)),
        const_spec((1, FC2P)),
        const_spec((FC2P, HEADP)),
        const_spec((1, HEADP)),
    ]
    out_spec = pl.BlockSpec((TB, OUTW), lambda i: (i, 0))

    return pl.pallas_call(
        actor_critic_kernel,
        out_shape=jax.ShapeDtypeStruct((BP, OUTW), jnp.float32),
        grid=(n_tiles,),
        in_specs=in_specs,
        out_specs=out_spec,
        compiler_params=pltpu.CompilerParams(
            dimension_semantics=("parallel",)),      # split batch tiles across TCs (v7x)
    )


def actor_critic_forward(x, prep, *, batch_tile=None, lane_dense_out=False):
    """x: [B, IN] float32. prep: output of prepare_params().

    Returns (policy_logits [B, n_actions], value [B, 1]), both float32.
    """
    B, IN = x.shape
    w1, b1 = prep["w1"], prep["b1"]
    w2, b2 = prep["w2"], prep["b2"]
    wh, bh = prep["wh"], prep["bh"]
    NA = prep["n_actions"]
    HEAD = NA + 1
    assert w1.shape[0] == IN, "prepared params don't match input feature dim"
    FC1P, FC2P, HEADP = w1.shape[1], w2.shape[1], wh.shape[1]

    # Batch tiling: sublane multiples, large tiles to amortize per-step overhead.
    if batch_tile is None:
        batch_tile = min(1024, _round_up(B, SUB))
    TB = _round_up(batch_tile, SUB)
    BP = _round_up(B, TB)
    n_tiles = BP // TB
    # v7x: if the whole batch would be a single tile, split it so both
    # TensorCores get work (no-op for tiny batches already in one 8-row tile).
    if n_tiles == 1 and TB > SUB and B > SUB:
        TB = _round_up((TB + 1) // 2, SUB)
        BP = _round_up(B, TB)
        n_tiles = BP // TB

    # Only the batch dim of x is (maybe) padded; feature dim stays at true IN.
    xp = x if BP == B else jnp.pad(x, ((0, BP - B), (0, 0)))

    # True-width output (NA+1) cuts writeback ~25x when DMA-bound; the
    # lane-dense 128-wide path is kept for store-slot-bound profiles.
    OUTW = HEADP if lane_dense_out else HEAD

    try:
        call = _build_pallas_call(TB, n_tiles, IN, FC1P, FC2P, HEADP, OUTW, BP,
                                  single_buffer_weights=True)
        fused = call(xp, w1, b1, w2, b2, wh, bh)
    except Exception:
        # Fallback if this jax build rejects pipeline_mode=pl.Buffered(1).
        call = _build_pallas_call(TB, n_tiles, IN, FC1P, FC2P, HEADP, OUTW, BP,
                                  single_buffer_weights=False)
        fused = call(xp, w1, b1, w2, b2, wh, bh)

    policy = fused[:B, :NA]
    value = fused[:B, NA:NA + 1]
    return policy, value


def init_params(key, input_dim, fc1_dims, fc2_dims, n_actions):
    """Mimics nn.Linear init U(-1/sqrt(fan_in), 1/sqrt(fan_in)).
    Weights stored as [in, out] (transposed vs. PyTorch's [out, in])."""
    ks = jax.random.split(key, 8)

    def linear(kw, kb, fan_in, fan_out):
        bound = 1.0 / jnp.sqrt(jnp.float32(fan_in))
        w = jax.random.uniform(kw, (fan_in, fan_out), jnp.float32, -bound, bound)
        b = jax.random.uniform(kb, (1, fan_out), jnp.float32, -bound, bound)
        return w, b

    w1, b1 = linear(ks[0], ks[1], input_dim, fc1_dims)
    w2, b2 = linear(ks[2], ks[3], fc1_dims, fc2_dims)
    wa, ba = linear(ks[4], ks[5], fc2_dims, n_actions)
    wc, bc = linear(ks[6], ks[7], fc2_dims, 1)
    return dict(w1=w1, b1=b1, w2=w2, b2=b2, wa=wa, ba=ba, wc=wc, bc=bc)


def reference_forward(x, p):
    h1 = jnp.maximum(x @ p["w1"] + p["b1"], 0.0)
    h2 = jnp.maximum(h1 @ p["w2"] + p["b2"], 0.0)
    return h2 @ p["wa"] + p["ba"], h2 @ p["wc"] + p["bc"]


if __name__ == "__main__":
    # Small shapes consistent with the module's forward:
    # observation [batch=2, input_dims=8], fc1=32, fc2=32, n_actions=4
    B, IN, FC1, FC2, NA = 2, 8, 32, 32, 4

    key = jax.random.PRNGKey(0)
    k_obs, k_par = jax.random.split(key)
    x = jax.random.normal(k_obs, (B, IN), dtype=jnp.float32)
    params = init_params(k_par, IN, FC1, FC2, NA)

    pol_ref, val_ref = reference_forward(x, params)

    # f32 operand path: tight check against the pure-JAX reference.
    prep_f32 = prepare_params(params, param_dtype=jnp.float32)
    policy, value = actor_critic_forward(x, prep_f32)
    jax.block_until_ready((policy, value))
    assert policy.shape == (B, NA) and value.shape == (B, 1)
    assert jnp.allclose(policy, pol_ref, atol=1e-5, rtol=1e-5)
    assert jnp.allclose(value, val_ref, atol=1e-5, rtol=1e-5)

    # Lane-dense (128-wide) output variant: same results, alternate out_spec.
    pol_ld, val_ld = actor_critic_forward(x, prep_f32, lane_dense_out=True)
    jax.block_until_ready((pol_ld, val_ld))
    assert jnp.allclose(pol_ld, pol_ref, atol=1e-5, rtol=1e-5)
    assert jnp.allclose(val_ld, val_ref, atol=1e-5, rtol=1e-5)

    # Default bf16 MXU path: operands rounded to bf16, accumulation stays f32.
    prep_bf16 = prepare_params(params)
    pol16, val16 = actor_critic_forward(x, prep_bf16)
    jax.block_until_ready((pol16, val16))
    assert jnp.allclose(pol16, pol_ref, atol=1e-1, rtol=1e-1)
    assert jnp.allclose(val16, val_ref, atol=1e-1, rtol=1e-1)

    # Larger batch: exercises batch padding, the tile-split (>=2 grid steps for
    # v7x's two TensorCores), and multi-tile pipelining.
    BL = 40
    xl = jax.random.normal(jax.random.PRNGKey(1), (BL, IN), dtype=jnp.float32)
    pol_l_ref, val_l_ref = reference_forward(xl, params)
    pol_l, val_l = actor_critic_forward(xl, prep_f32)
    jax.block_until_ready((pol_l, val_l))
    assert pol_l.shape == (BL, NA) and val_l.shape == (BL, 1)
    assert jnp.allclose(pol_l, pol_l_ref, atol=1e-5, rtol=1e-5)
    assert jnp.allclose(val_l, val_l_ref, atol=1e-5, rtol=1e-5)

    print("KERNEL_OK")
</pallas_src>

<mosaic_0001>
module attributes {stable_mosaic.version = 11 : i64} {
  func.func @actor_critic_kernel(%arg0: i32, %arg1: memref<8x8xf32, #tpu.memory_space<vmem>>, %arg2: memref<8x128xf32, #tpu.memory_space<vmem>>, %arg3: memref<1x128xf32, #tpu.memory_space<vmem>>, %arg4: memref<128x128xf32, #tpu.memory_space<vmem>>, %arg5: memref<1x128xf32, #tpu.memory_space<vmem>>, %arg6: memref<128x128xf32, #tpu.memory_space<vmem>>, %arg7: memref<1x128xf32, #tpu.memory_space<vmem>>, %arg8: memref<8x5xf32, #tpu.memory_space<vmem>>) attributes {dimension_semantics = [#tpu.dimension_semantics<parallel>], iteration_bounds = array<i64: 1>, scalar_prefetch = 0 : i64, scratch_operands = 0 : i64, tpu.core_type = #tpu.core_type<tc>, window_params = [{transform_indices = @transform_0, window_bounds = array<i64: 8, 8>}, {pipeline_mode = #tpu.pipeline_mode<synchronous>, transform_indices = @transform_1, window_bounds = array<i64: 8, 128>}, {pipeline_mode = #tpu.pipeline_mode<synchronous>, transform_indices = @transform_2, window_bounds = array<i64: 1, 128>}, {pipeline_mode = #tpu.pipeline_mode<synchronous>, transform_indices = @transform_3, window_bounds = array<i64: 128, 128>}, {pipeline_mode = #tpu.pipeline_mode<synchronous>, transform_indices = @transform_4, window_bounds = array<i64: 1, 128>}, {pipeline_mode = #tpu.pipeline_mode<synchronous>, transform_indices = @transform_5, window_bounds = array<i64: 128, 128>}, {pipeline_mode = #tpu.pipeline_mode<synchronous>, transform_indices = @transform_6, window_bounds = array<i64: 1, 128>}, {transform_indices = @transform_7, window_bounds = array<i64: 8, 5>}]} {
    %c0 = arith.constant 0 : index
    %c0_0 = arith.constant 0 : index
    %0 = vector.load %arg1[%c0, %c0_0] : memref<8x8xf32, #tpu.memory_space<vmem>>, vector<8x8xf32>
    %c0_1 = arith.constant 0 : index
    %c0_2 = arith.constant 0 : index
    %1 = vector.load %arg2[%c0_1, %c0_2] : memref<8x128xf32, #tpu.memory_space<vmem>>, vector<8x128xf32>
    %cst = arith.constant dense<0.000000e+00> : vector<8x128xf32>
    %2 = tpu.matmul %0, %1, %cst {dimension_numbers = #tpu.dot_dimension_numbers<[1], [0], [0], [1], [0, 0, 1, 1], [], []>} : vector<8x8xf32>, vector<8x128xf32>, vector<8x128xf32> -> vector<8x128xf32>
    %c0_3 = arith.constant 0 : index
    %c0_4 = arith.constant 0 : index
    %3 = vector.load %arg3[%c0_3, %c0_4] : memref<1x128xf32, #tpu.memory_space<vmem>>, vector<1x128xf32>
    %4 = vector.broadcast %3 : vector<1x128xf32> to vector<8x128xf32>
    %5 = arith.addf %2, %4 : vector<8x128xf32>
    %cst_5 = arith.constant 0.000000e+00 : f32
    %6 = vector.broadcast %cst_5 : f32 to vector<8x128xf32>
    %7 = arith.maximumf %5, %6 : vector<8x128xf32>
    %c0_6 = arith.constant 0 : index
    %c0_7 = arith.constant 0 : index
    %8 = vector.load %arg4[%c0_6, %c0_7] : memref<128x128xf32, #tpu.memory_space<vmem>>, vector<128x128xf32>
    %cst_8 = arith.constant dense<0.000000e+00> : vector<8x128xf32>
    %9 = tpu.matmul %7, %8, %cst_8 {dimension_numbers = #tpu.dot_dimension_numbers<[1], [0], [0], [1], [0, 0, 1, 1], [], []>} : vector<8x128xf32>, vector<128x128xf32>, vector<8x128xf32> -> vector<8x128xf32>
    %c0_9 = arith.constant 0 : index
    %c0_10 = arith.constant 0 : index
    %10 = vector.load %arg5[%c0_9, %c0_10] : memref<1x128xf32, #tpu.memory_space<vmem>>, vector<1x128xf32>
    %11 = vector.broadcast %10 : vector<1x128xf32> to vector<8x128xf32>
    %12 = arith.addf %9, %11 : vector<8x128xf32>
    %cst_11 = arith.constant 0.000000e+00 : f32
    %13 = vector.broadcast %cst_11 : f32 to vector<8x128xf32>
    %14 = arith.maximumf %12, %13 : vector<8x128xf32>
    %c0_12 = arith.constant 0 : index
    %c0_13 = arith.constant 0 : index
    %15 = vector.load %arg6[%c0_12, %c0_13] : memref<128x128xf32, #tpu.memory_space<vmem>>, vector<128x128xf32>
    %cst_14 = arith.constant dense<0.000000e+00> : vector<8x128xf32>
    %16 = tpu.matmul %14, %15, %cst_14 {dimension_numbers = #tpu.dot_dimension_numbers<[1], [0], [0], [1], [0, 0, 1, 1], [], []>} : vector<8x128xf32>, vector<128x128xf32>, vector<8x128xf32> -> vector<8x128xf32>
    %c0_15 = arith.constant 0 : index
    %c0_16 = arith.constant 0 : index
    %17 = vector.load %arg7[%c0_15, %c0_16] : memref<1x128xf32, #tpu.memory_space<vmem>>, vector<1x128xf32>
    %18 = vector.broadcast %17 : vector<1x128xf32> to vector<8x128xf32>
    %19 = arith.addf %16, %18 : vector<8x128xf32>
    %20 = vector.extract_strided_slice %19 {offsets = [0, 0], sizes = [8, 5], strides = [1, 1]} : vector<8x128xf32> to vector<8x5xf32>
    %c0_17 = arith.constant 0 : index
    %c0_18 = arith.constant 0 : index
    %21 = vector.load %arg8[%c0_17, %c0_18] : memref<8x5xf32, #tpu.memory_space<vmem>>, vector<8x5xf32>
    tpu.vector_store %arg8[%c0_17, %c0_18], %20 {strides = array<i32>} : memref<8x5xf32, #tpu.memory_space<vmem>>, vector<8x5xf32>,
    return
  }
  func.func @transform_0(%arg0: i32) -> (i32, i32) {
    %c0_i32 = arith.constant 0 : i32
    %c0_i32_0 = arith.constant 0 : i32
    return %arg0, %c0_i32 : i32, i32
  }
  func.func @transform_1(%arg0: i32) -> (i32, i32) {
    %c0_i32 = arith.constant 0 : i32
    %c0_i32_0 = arith.constant 0 : i32
    %c0_i32_1 = arith.constant 0 : i32
    return %c0_i32, %c0_i32_0 : i32, i32
  }
  func.func @transform_2(%arg0: i32) -> (i32, i32) {
    %c0_i32 = arith.constant 0 : i32
    %c0_i32_0 = arith.constant 0 : i32
    %c0_i32_1 = arith.constant 0 : i32
    return %c0_i32, %c0_i32_0 : i32, i32
  }
  func.func @transform_3(%arg0: i32) -> (i32, i32) {
    %c0_i32 = arith.constant 0 : i32
    %c0_i32_0 = arith.constant 0 : i32
    %c0_i32_1 = arith.constant 0 : i32
    return %c0_i32, %c0_i32_0 : i32, i32
  }
  func.func @transform_4(%arg0: i32) -> (i32, i32) {
    %c0_i32 = arith.constant 0 : i32
    %c0_i32_0 = arith.constant 0 : i32
    %c0_i32_1 = arith.constant 0 : i32
    return %c0_i32, %c0_i32_0 : i32, i32
  }
  func.func @transform_5(%arg0: i32) -> (i32, i32) {
    %c0_i32 = arith.constant 0 : i32
    %c0_i32_0 = arith.constant 0 : i32
    %c0_i32_1 = arith.constant 0 : i32
    return %c0_i32, %c0_i32_0 : i32, i32
  }
  func.func @transform_6(%arg0: i32) -> (i32, i32) {
    %c0_i32 = arith.constant 0 : i32
    %c0_i32_0 = arith.constant 0 : i32
    %c0_i32_1 = arith.constant 0 : i32
    return %c0_i32, %c0_i32_0 : i32, i32
  }
  func.func @transform_7(%arg0: i32) -> (i32, i32) {
    %c0_i32 = arith.constant 0 : i32
    %c0_i32_0 = arith.constant 0 : i32
    return %arg0, %c0_i32 : i32, i32
  }
}

module attributes {stable_mosaic.version = 11 : i64} {
  func.func @actor_critic_kernel(%arg0: i32, %arg1: memref<8x8xf32, #tpu.memory_space<vmem>>, %arg2: memref<8x128xf32, #tpu.memory_space<vmem>>, %arg3: memref<1x128xf32, #tpu.memory_space<vmem>>, %arg4: memref<128x128xf32, #tpu.memory_space<vmem>>, %arg5: memref<1x128xf32, #tpu.memory_space<vmem>>, %arg6: memref<128x128xf32, #tpu.memory_space<vmem>>, %arg7: memref<1x128xf32, #tpu.memory_space<vmem>>, %arg8: memref<8x5xf32, #tpu.memory_space<vmem>>) attributes {dimension_semantics = [#tpu.dimension_semantics<parallel>], iteration_bounds = array<i64: 1>, scalar_prefetch = 0 : i64, scratch_operands = 0 : i64, tpu.core_type = #tpu.core_type<tc>, window_params = [{transform_indices = @transform_0, window_bounds = array<i64: 8, 8>}, {pipeline_mode = #tpu.pipeline_mode<synchronous>, transform_indices = @transform_1, window_bounds = array<i64: 8, 128>}, {pipeline_mode = #tpu.pipeline_mode<synchronous>, transform_indices = @transform_2, window_bounds = array<i64: 1, 128>}, {pipeline_mode = #tpu.pipeline_mode<synchronous>, transform_indices = @transform_3, window_bounds = array<i64: 128, 128>}, {pipeline_mode = #tpu.pipeline_mode<synchronous>, transform_indices = @transform_4, window_bounds = array<i64: 1, 128>}, {pipeline_mode = #tpu.pipeline_mode<synchronous>, transform_indices = @transform_5, window_bounds = array<i64: 128, 128>}, {pipeline_mode = #tpu.pipeline_mode<synchronous>, transform_indices = @transform_6, window_bounds = array<i64: 1, 128>}, {transform_indices = @transform_7, window_bounds = array<i64: 8, 5>}]} {
    %c0 = arith.constant 0 : index
    %c0_0 = arith.constant 0 : index
    %0 = vector.load %arg1[%c0, %c0_0] : memref<8x8xf32, #tpu.memory_space<vmem>>, vector<8x8xf32>
    %c0_1 = arith.constant 0 : index
    %c0_2 = arith.constant 0 : index
    %1 = vector.load %arg2[%c0_1, %c0_2] : memref<8x128xf32, #tpu.memory_space<vmem>>, vector<8x128xf32>
    %cst = arith.constant dense<0.000000e+00> : vector<8x128xf32>
    %2 = tpu.matmul %0, %1, %cst {dimension_numbers = #tpu.dot_dimension_numbers<[1], [0], [0], [1], [0, 0, 1, 1], [], []>} : vector<8x8xf32>, vector<8x128xf32>, vector<8x128xf32> -> vector<8x128xf32>
    %c0_3 = arith.constant 0 : index
    %c0_4 = arith.constant 0 : index
    %3 = vector.load %arg3[%c0_3, %c0_4] : memref<1x128xf32, #tpu.memory_space<vmem>>, vector<1x128xf32>
    %4 = vector.broadcast %3 : vector<1x128xf32> to vector<8x128xf32>
    %5 = arith.addf %2, %4 : vector<8x128xf32>
    %cst_5 = arith.constant 0.000000e+00 : f32
    %6 = vector.broadcast %cst_5 : f32 to vector<8x128xf32>
    %7 = arith.maximumf %5, %6 : vector<8x128xf32>
    %c0_6 = arith.constant 0 : index
    %c0_7 = arith.constant 0 : index
    %8 = vector.load %arg4[%c0_6, %c0_7] : memref<128x128xf32, #tpu.memory_space<vmem>>, vector<128x128xf32>
    %cst_8 = arith.constant dense<0.000000e+00> : vector<8x128xf32>
    %9 = tpu.matmul %7, %8, %cst_8 {dimension_numbers = #tpu.dot_dimension_numbers<[1], [0], [0], [1], [0, 0, 1, 1], [], []>} : vector<8x128xf32>, vector<128x128xf32>, vector<8x128xf32> -> vector<8x128xf32>
    %c0_9 = arith.constant 0 : index
    %c0_10 = arith.constant 0 : index
    %10 = vector.load %arg5[%c0_9, %c0_10] : memref<1x128xf32, #tpu.memory_space<vmem>>, vector<1x128xf32>
    %11 = vector.broadcast %10 : vector<1x128xf32> to vector<8x128xf32>
    %12 = arith.addf %9, %11 : vector<8x128xf32>
    %cst_11 = arith.constant 0.000000e+00 : f32
    %13 = vector.broadcast %cst_11 : f32 to vector<8x128xf32>
    %14 = arith.maximumf %12, %13 : vector<8x128xf32>
    %c0_12 = arith.constant 0 : index
    %c0_13 = arith.constant 0 : index
    %15 = vector.load %arg6[%c0_12, %c0_13] : memref<128x128xf32, #tpu.memory_space<vmem>>, vector<128x128xf32>
    %cst_14 = arith.constant dense<0.000000e+00> : vector<8x128xf32>
    %16 = tpu.matmul %14, %15, %cst_14 {dimension_numbers = #tpu.dot_dimension_numbers<[1], [0], [0], [1], [0, 0, 1, 1], [], []>} : vector<8x128xf32>, vector<128x128xf32>, vector<8x128xf32> -> vector<8x128xf32>
    %c0_15 = arith.constant 0 : index
    %c0_16 = arith.constant 0 : index
    %17 = vector.load %arg7[%c0_15, %c0_16] : memref<1x128xf32, #tpu.memory_space<vmem>>, vector<1x128xf32>
    %18 = vector.broadcast %17 : vector<1x128xf32> to vector<8x128xf32>
    %19 = arith.addf %16, %18 : vector<8x128xf32>
    %20 = vector.extract_strided_slice %19 {offsets = [0, 0], sizes = [8, 5], strides = [1, 1]} : vector<8x128xf32> to vector<8x5xf32>
    %c0_17 = arith.constant 0 : index
    %c0_18 = arith.constant 0 : index
    %21 = vector.load %arg8[%c0_17, %c0_18] : memref<8x5xf32, #tpu.memory_space<vmem>>, vector<8x5xf32>
    tpu.vector_store %arg8[%c0_17, %c0_18], %20 {strides = array<i32>} : memref<8x5xf32, #tpu.memory_space<vmem>>, vector<8x5xf32>,
    return
  }
  func.func @transform_0(%arg0: i32) -> (i32, i32) {
    %c0_i32 = arith.constant 0 : i32
    %c0_i32_0 = arith.constant 0 : i32
    return %arg0, %c0_i32 : i32, i32
  }
  func.func @transform_1(%arg0: i32) -> (i32, i32) {
    %c0_i32 = arith.constant 0 : i32
    %c0_i32_0 = arith.constant 0 : i32
    %c0_i32_1 = arith.constant 0 : i32
    return %c0_i32, %c0_i32_0 : i32, i32
  }
  func.func @transform_2(%arg0: i32) -> (i32, i32) {
    %c0_i32 = arith.constant 0 : i32
    %c0_i32_0 = arith.constant 0 : i32
    %c0_i32_1 = arith.constant 0 : i32
    return %c0_i32, %c0_i32_0 : i32, i32
  }
  func.func @transform_3(%arg0: i32) -> (i32, i32) {
    %c0_i32 = arith.constant 0 : i32
    %c0_i32_0 = arith.constant 0 : i32
    %c0_i32_1 = arith.constant 0 : i32
    return %c0_i32, %c0_i32_0 : i32, i32
  }
  func.func @transform_4(%arg0: i32) -> (i32, i32) {
    %c0_i32 = arith.constant 0 : i32
    %c0_i32_0 = arith.constant 0 : i32
    %c0_i32_1 = arith.constant 0 : i32
    return %c0_i32, %c0_i32_0 : i32, i32
  }
  func.func @transform_5(%arg0: i32) -> (i32, i32) {
    %c0_i32 = arith.constant 0 : i32
    %c0_i32_0 = arith.constant 0 : i32
    %c0_i32_1 = arith.constant 0 : i32
    return %c0_i32, %c0_i32_0 : i32, i32
  }
  func.func @transform_6(%arg0: i32) -> (i32, i32) {
    %c0_i32 = arith.constant 0 : i32
    %c0_i32_0 = arith.constant 0 : i32
    %c0_i32_1 = arith.constant 0 : i32
    return %c0_i32, %c0_i32_0 : i32, i32
  }
  func.func @transform_7(%arg0: i32) -> (i32, i32) {
    %c0_i32 = arith.constant 0 : i32
    %c0_i32_0 = arith.constant 0 : i32
    return %arg0, %c0_i32 : i32, i32
  }
}

</mosaic_0001>

<bundles_post_ra>
// kernel: tpu_custom_call.1
= control target key start
LH: loop header
LB: loop body
LE: loop exit
PB: predicated region body
PF: predicated region fallthrough
CT: control target
= control target key end

     0   :  { %12 = vsyncpa [#allocation3], 0  ;;  %s797_s0 = inlined_call_operand.hbm [shape: f32[8,8], index: 0, kind: input, shape index: {}]   ;;  %s798_s1 = inlined_call_operand.hbm [shape: f32[8,128], index: 1, kind: input, shape index: {}]   ;;  %s799_s2 = inlined_call_operand.vmem [shape: f32[1,128], index: 2, kind: input, shape index: {}]   ;;  %s800_s3 = inlined_call_operand.hbm [shape: f32[128,128], index: 3, kind: input, shape index: {}]   ;;  %s801_s4 = inlined_call_operand.vmem [shape: f32[1,128], index: 4, kind: input, shape index: {}]   ;;  %s802_s5 = inlined_call_operand.hbm [shape: f32[128,128], index: 5, kind: input, shape index: {}]   ;;  %s803_s6 = inlined_call_operand.vmem [shape: f32[1,128], index: 6, kind: input, shape index: {}]   ;;  %s804_s7 = inlined_call_operand.hbm [shape: f32[8,5], index: 7, kind: output, shape index: {}]  }
   0x1   :  { %13 = vsyncpa [#allocation6], 0 }
   0x2   :  { %14 = vsyncpa [#allocation9], 0 }
   0x3   :  { %15 = vsyncpa [#allocation4], 0  ;;  %s659_s24 = smov [#allocation5]   ;;  %s660_s26 = smov [#allocation2]  }
   0x4   :  { %s32_s25 = sshll.u32 %s659_s24, 4  ;;  %s22_s27 = sshll.u32 %s660_s26, 4  ;;  %s33_s25 = int_to_ptr.vmem [resolvable:$true] %s32_s25  ;;  %s23_s27 = int_to_ptr.vmem [resolvable:$true] %s22_s27 }
   0x5   :  { %s541_s30 = scalar_lea.hbm %s798_s1, 128 }
   0x6   :  { %p542_p0 = scmp.ne.s32.totalorder %s798_s1, %s541_s30  ;;  %p545_p1 = scmp.lt.u32.totalorder %s541_s30, %s798_s1 }
   0x8   :  { %p547_p2 = pnand %p545_p1, %p542_p0 }
   0xa   :  { %550 = shalt.err (!%p547_p2)
}
   0xb   :  { %s551_s12 = scalar_lea.vmem %s33_s25, 128  ;;  %p556_p4 = scmp.lt.s32.totalorder %s33_s25, %s33_s25 }
   0xc   :  { %p552_p3 = scmp.ne.s32.totalorder %s33_s25, %s551_s12  ;;  %p557_p5 = scmp.lt.s32.totalorder %s551_s12, %s551_s12 }
   0xe   :  { %p558_p6 = por %p557_p5, %p556_p4 }
  0x10   :  { %p559_p7 = pnand %p558_p6, %p552_p3 }
  0x12   :  { %562 = shalt.err (!%p559_p7)
}
  0x13   :  { %35 = dma.hbm_to_vmem [thread:$0]  %s798_s1, 128, %s33_s25, [#allocation6]  }
  0x14   :  { %s563_s17 = scalar_lea.hbm %s797_s0, 128 }
  0x15   :  { %p564_p8 = scmp.ne.s32.totalorder %s797_s0, %s563_s17  ;;  %p567_p9 = scmp.lt.u32.totalorder %s563_s17, %s797_s0 }
  0x17   :  { %p569_p10 = pnand %p567_p9, %p564_p8 }
  0x19   :  { %572 = shalt.err (!%p569_p10)
}
  0x1a   :  { %s573_s22 = scalar_lea.vmem %s23_s27, 128  ;;  %p578_p12 = scmp.lt.s32.totalorder %s23_s27, %s23_s27 }
  0x1b   :  { %p574_p11 = scmp.ne.s32.totalorder %s23_s27, %s573_s22  ;;  %p579_p13 = scmp.lt.s32.totalorder %s573_s22, %s573_s22 }
  0x1d   :  { %p580_p0 = por %p579_p13, %p578_p12 }
  0x1f   :  { %p581_p1 = pnand %p580_p0, %p574_p11 }
  0x21   :  { %584 = shalt.err (!%p581_p1)
}
  0x22   :  { %25 = dma.hbm_to_vmem [thread:$0]  %s797_s0, 128, %s23_s27, [#allocation3]  }
  0x23   :  { %s661_s24 = smov [#allocation7]   ;;  %s585_s29 = scalar_lea.hbm %s800_s3, 2048 }
  0x24   :  { %s43_s25 = sshll.u32 %s661_s24, 4  ;;  %p586_p2 = scmp.ne.s32.totalorder %s800_s3, %s585_s29  ;;  %s44_s25 = int_to_ptr.vmem [resolvable:$true] %s43_s25 }
  0x25   :  { %p589_p3 = scmp.lt.u32.totalorder %s585_s29, %s800_s3 }
  0x27   :  { %p591_p4 = pnand %p589_p3, %p586_p2 }
  0x29   :  { %594 = shalt.err (!%p591_p4)
}
  0x2a   :  { %s595_s11 = scalar_lea.vmem %s44_s25, 2048  ;;  %p600_p6 = scmp.lt.s32.totalorder %s44_s25, %s44_s25 }
  0x2b   :  { %p596_p5 = scmp.ne.s32.totalorder %s44_s25, %s595_s11  ;;  %p601_p7 = scmp.lt.s32.totalorder %s595_s11, %s595_s11 }
  0x2d   :  { %p602_p8 = por %p601_p7, %p600_p6 }
  0x2f   :  { %p603_p9 = pnand %p602_p8, %p596_p5 }
  0x31   :  { %606 = shalt.err (!%p603_p9)
}
  0x32   :  { %s662_s0 = smov 128   ;;  %s663_s27 = smov 8  }
  0x33   :  { %49 = dma.hbm_to_vmem [thread:$0]  %s800_s3, 2048, %s44_s25, [#allocation6], %s662_s0, %s662_s0, %s663_s27  }
  0x34   :  { %s664_s14 = smov [#allocation8]   ;;  %s607_s18 = scalar_lea.hbm %s802_s5, 2048 }
  0x35   :  { %s57_s15 = sshll.u32 %s664_s14, 4  ;;  %p608_p10 = scmp.ne.s32.totalorder %s802_s5, %s607_s18  ;;  %s58_s15 = int_to_ptr.vmem [resolvable:$true] %s57_s15 }
  0x36   :  { %p611_p11 = scmp.lt.u32.totalorder %s607_s18, %s802_s5 }
  0x38   :  { %p613_p12 = pnand %p611_p11, %p608_p10 }
  0x3a   :  { %616 = shalt.err (!%p613_p12)
}
  0x3b   :  { %s617_s1 = scalar_lea.vmem %s58_s15, 2048  ;;  %p622_p0 = scmp.lt.s32.totalorder %s58_s15, %s58_s15 }
  0x3c   :  { %p618_p13 = scmp.ne.s32.totalorder %s58_s15, %s617_s1  ;;  %p623_p1 = scmp.lt.s32.totalorder %s617_s1, %s617_s1 }
  0x3e   :  { %p624_p2 = por %p623_p1, %p622_p0 }
  0x40   :  { %p625_p3 = pnand %p624_p2, %p618_p13 }
  0x42   :  { %628 = shalt.err (!%p625_p3)
}
  0x43   :  { %63 = dma.hbm_to_vmem [thread:$0]  %s802_s5, 2048, %s58_s15, [#allocation9], %s662_s0, %s662_s0, %s663_s27  }
  0x44   :  { %651 = dma.done.wait [#allocation3], 128  }
  0x45   :  { %652 = vsyncadd [#allocation3], 4294967168 }
  0x46   :  { %653 = dma.done.wait [#allocation6], 2176  }
  0x47   :  { %654 = vsyncadd [#allocation6], 4294965120 }
  0x48   :  { %655 = dma.done.wait [#allocation9], 2048  }
  0x49   :  { %656 = vsyncadd [#allocation9], 4294965248  ;;  %v665_v0 = vmov 0.0   ;;  %vm666_vm0 = vmmov 0   ;;  %v667_v1 = vmov 0.0|0.0   ;;  %vm87_vm1 = vcmask 64512  }
  0x4a   :  { %408 = vmatprep.subr.mxu0 %v665_v0  ;;  %410 = vmatprep.mubr.msk.f32.mxu0 %vm666_vm0, %v665_v0  ;;  %v79_v2 = vld [vmem:[#allocation5] sm:$0xff]  ;;  %v78_v3 = vld [vmem:[#allocation2] sm:$0xff]  ;;  %v162_v4 = vld [vmem:[#allocation7] sm:$0xff]  ;;  %s668_s29 = smov [#allocation10]   ;;  %vm349_vm2 = vcmask 39936  }
  0x4b   :  { %483 = vmatprep.subr.bf16.mxu1 %v667_v1  ;;  %445 = vmatprep.mubr.msk.f32.mxu1 %vm666_vm0, %v665_v0  ;;  %v163_v5 = vld [vmem:[#allocation7 + $0x8] sm:$0xff]  ;;  %v164_v6 = vld [vmem:[#allocation7 + $0x10] sm:$0xff]  ;;  %v165_v7 = vld [vmem:[#allocation7 + $0x18] sm:$0xff]  ;;  %s357_s30 = sshll.u32 %s668_s29, 4  ;;  %s358_s30 = int_to_ptr.vmem [resolvable:$true] %s357_s30 }
  0x4c   :  { %409 = vmatpush3.msra.mxu0 %v79_v2  ;;  %v484_v8 = vpack.c.bf16 %v163_v5, %v162_v4  ;;  %v487_v9 = vpack.c.bf16 %v165_v7, %v164_v6  ;;  %v166_v10 = vld [vmem:[#allocation7 + $0x20] sm:$0xff]  ;;  %v167_v11 = vld [vmem:[#allocation7 + $0x28] sm:$0xff]  ;;  %v168_v13 = vld [vmem:[#allocation7 + $0x30] sm:$0xff]  ;;  %s629_s8 = scalar_lea.vmem %s358_s30, 128  ;;  %p634_p5 = scmp.lt.s32.totalorder %s358_s30, %s358_s30 }
  0x4d   :  { %411 = vmatmul.mubr.msk.f32.vlgmr.msra.gmra.mrb[0].mxu0 %vm87_vm1, %v78_v3  ;;  %507 = vmatprep.subr.bf16.mxu0 %v667_v1  ;;  %v490_v12 = vpack.c.bf16 %v167_v11, %v166_v10  ;;  %v169_v14 = vld [vmem:[#allocation7 + $0x38] sm:$0xff]  ;;  %v170_v16 = vld [vmem:[#allocation7 + $0x40] sm:$0xff]  ;;  %v171_v17 = vld [vmem:[#allocation7 + $0x48] sm:$0xff]  ;;  %p630_p4 = scmp.ne.s32.totalorder %s358_s30, %s629_s8  ;;  %p635_p6 = scmp.lt.s32.totalorder %s629_s8, %s629_s8 }
  0x4e   :  { %480 = vmatprep.mubr.msk.f32.mxu0 %vm666_vm0, %v665_v0  ;;  %485 = vmatpush3.bf16.msra.mxu1 %v484_v8  ;;  %v493_v15 = vpack.c.bf16 %v169_v14, %v168_v13  ;;  %v496_v18 = vpack.c.bf16 %v171_v17, %v170_v16  ;;  %v172_v19 = vld [vmem:[#allocation7 + $0x50] sm:$0xff]  ;;  %v173_v20 = vld [vmem:[#allocation7 + $0x58] sm:$0xff]  ;;  %v174_v22 = vld [vmem:[#allocation7 + $0x60] sm:$0xff] }
  0x4f   :  { %486 = vmatprep.subr.bf16.mxu1 %v667_v1  ;;  %v499_v21 = vpack.c.bf16 %v173_v20, %v172_v19  ;;  %v175_v23 = vld [vmem:[#allocation7 + $0x68] sm:$0xff]  ;;  %v176_v25 = vld [vmem:[#allocation7 + $0x70] sm:$0xff]  ;;  %v177_v26 = vld [vmem:[#allocation7 + $0x78] sm:$0xff]  ;;  %p636_p7 = por %p635_p6, %p634_p5 }
  0x50   :  { %v502_v24 = vpack.c.bf16 %v175_v23, %v174_v22  ;;  %v505_v27 = vpack.c.bf16 %v177_v26, %v176_v25  ;;  %v256_v28 = vld [vmem:[#allocation8] sm:$0xff]  ;;  %v257_v29 = vld [vmem:[#allocation8 + $0x8] sm:$0xff]  ;;  %v258_v30 = vld [vmem:[#allocation8 + $0x10] sm:$0xff] }
  0x51   :  { %v508_v31 = vpack.c.bf16 %v257_v29, %v256_v28  ;;  %v259_v32 = vld [vmem:[#allocation8 + $0x18] sm:$0xff]  ;;  %v260_v34 = vld [vmem:[#allocation8 + $0x20] sm:$0xff]  ;;  %v261_v35 = vld [vmem:[#allocation8 + $0x28] sm:$0xff]  ;;  %p637_p8 = pnand %p636_p7, %p630_p4 }
  0x52   :  { %488 = vmatpush3.bf16.msra.mxu1 %v487_v9  ;;  %v511_v33 = vpack.c.bf16 %v259_v32, %v258_v30  ;;  %v514_v36 = vpack.c.bf16 %v261_v35, %v260_v34  ;;  %v262_v37 = vld [vmem:[#allocation8 + $0x30] sm:$0xff]  ;;  %v263_v38 = vld [vmem:[#allocation8 + $0x38] sm:$0xff]  ;;  %v264_v40 = vld [vmem:[#allocation8 + $0x40] sm:$0xff] }
  0x53   :  { %489 = vmatprep.subr.bf16.mxu1 %v667_v1  ;;  %509 = vmatpush3.bf16.msra.mxu0 %v508_v31  ;;  %v517_v39 = vpack.c.bf16 %v263_v38, %v262_v37  ;;  %v265_v41 = vld [vmem:[#allocation8 + $0x48] sm:$0xff]  ;;  %v266_v43 = vld [vmem:[#allocation8 + $0x50] sm:$0xff]  ;;  %v267_v44 = vld [vmem:[#allocation8 + $0x58] sm:$0xff] }
  0x54   :  { %510 = vmatprep.subr.bf16.mxu0 %v667_v1  ;;  %v520_v42 = vpack.c.bf16 %v265_v41, %v264_v40  ;;  %v523_v45 = vpack.c.bf16 %v267_v44, %v266_v43  ;;  %v268_v46 = vld [vmem:[#allocation8 + $0x60] sm:$0xff]  ;;  %v269_v47 = vld [vmem:[#allocation8 + $0x68] sm:$0xff]  ;;  %v368_v49 = vld [vmem:[%s799_s2] ss:$0 sm:$0xff] }
  0x55   :  { %v526_v48 = vpack.c.bf16 %v269_v47, %v268_v46  ;;  %v270_v54 = vld [vmem:[#allocation8 + $0x70] sm:$0xff]  ;;  %v271_v55 = vld [vmem:[#allocation8 + $0x78] sm:$0xff] }
  0x56   :  { %491 = vmatpush3.bf16.msra.mxu1 %v490_v12  ;;  %v529_v56 = vpack.c.bf16 %v271_v55, %v270_v54  ;;  %v370_v57 = vld [vmem:[%s801_s4] ss:$0 sm:$0xff] }
  0x57   :  { %492 = vmatprep.subr.bf16.mxu1 %v667_v1  ;;  %512 = vmatpush3.bf16.msra.mxu0 %v511_v33  ;;  %v371_v62 = vld [vmem:[%s803_s6] ss:$0 sm:$0xff] }
  0x58   :  { %513 = vmatprep.subr.bf16.mxu0 %v667_v1 }
  0x5a   :  { %494 = vmatpush3.bf16.msra.mxu1 %v493_v15 }
  0x5b   :  { %495 = vmatprep.subr.bf16.mxu1 %v667_v1  ;;  %515 = vmatpush3.bf16.msra.mxu0 %v514_v36 }
  0x5c   :  { %516 = vmatprep.subr.bf16.mxu0 %v667_v1 }
  0x5e   :  { %497 = vmatpush3.bf16.msra.mxu1 %v496_v18 }
  0x5f   :  { %498 = vmatprep.subr.bf16.mxu1 %v667_v1  ;;  %518 = vmatpush3.bf16.msra.mxu0 %v517_v39 }
  0x60   :  { %519 = vmatprep.subr.bf16.mxu0 %v667_v1 }
  0x62   :  { %500 = vmatpush3.bf16.msra.mxu1 %v499_v21 }
  0x63   :  { %501 = vmatprep.subr.bf16.mxu1 %v667_v1  ;;  %521 = vmatpush3.bf16.msra.mxu0 %v520_v42 }
  0x64   :  { %522 = vmatprep.subr.bf16.mxu0 %v667_v1 }
  0x66   :  { %503 = vmatpush3.bf16.msra.mxu1 %v502_v24 }
  0x67   :  { %504 = vmatprep.subr.bf16.mxu1 %v667_v1  ;;  %524 = vmatpush3.bf16.msra.mxu0 %v523_v45 }
  0x68   :  { %525 = vmatprep.subr.bf16.mxu0 %v667_v1 }
  0x6a   :  { %506 = vmatpush3.bf16.msra.mxu1 %v505_v27 }
  0x6b   :  { %527 = vmatpush3.bf16.msra.mxu0 %v526_v48 }
  0x6c   :  { %528 = vmatprep.subr.bf16.mxu0 %v667_v1 }
  0x6f   :  { %530 = vmatpush3.bf16.msra.mxu0 %v529_v56 }
 0x120   :  { %v157_v50 = vpop.f32.mrb[0].mxu0 }
 0x121   :  { %v158_v51 = vadd.f32 %v368_v49, %v157_v50  ;;  %v412_v52 = vpop.f32.mrb[1].mxu0 }
 0x123   :  { %v161_v53 = vmax.f32 %v158_v51, 0.0 }
 0x125   :  { %446 = vmatmul.mubr.f32.vlgmr.msra.gmra.mrb[0].mxu1 %v161_v53 }
 0x1f8   :  { %v251_v58 = vpop.f32.mrb[0].mxu1 }
 0x1f9   :  { %v252_v59 = vadd.f32 %v370_v57, %v251_v58  ;;  %v447_v60 = vpop.f32.mrb[1].mxu1 }
 0x1fb   :  { %v255_v61 = vmax.f32 %v252_v59, 0.0 }
 0x1fd   :  { %481 = vmatmul.mubr.f32.vlgmr.msra.gmra.mrb[2].mxu0 %v255_v61 }
 0x2d0   :  { %v345_v63 = vpop.f32.mrb[2].mxu0 }
 0x2d1   :  { %v346_v0 = vadd.f32 %v371_v62, %v345_v63  ;;  %v482_v1 = vpop.f32.mrb[3].mxu0 }
 0x2d3   :  { %350 = vst.msk [vmem:[#allocation10] sm:$0xff] %vm349_vm2, %v346_v0 }
 0x2d4   :  { %640 = shalt.err (!%p637_p8)
}
 0x2d5   :  { %s641_s10 = scalar_lea.hbm %s804_s7, 128 }
 0x2d6   :  { %p642_p9 = scmp.ne.s32.totalorder %s804_s7, %s641_s10  ;;  %p645_p10 = scmp.lt.u32.totalorder %s641_s10, %s804_s7 }
 0x2d8   :  { %p647_p11 = pnand %p645_p10, %p642_p9 }
 0x2da   :  { %650 = shalt.err (!%p647_p11)
}
 0x2db   :  { %360 = dma.vmem_to_hbm [thread:$0]  %s358_s30, 128, %s804_s7, [#allocation4]  }
 0x2dc   :  { %657 = dma.done.wait [#allocation4], 128  }
 0x2dd   :  { %658 = vsyncadd [#allocation4], 4294967168 }
 0x2de   :  { %364 = vsyncpa [#allocation3], 1 }
 0x2df   :  { %365 = vsyncpa [#allocation6], 1 }
 0x2e0   :  { %366 = vsyncpa [#allocation9], 1 }
 0x2e1   :  { %367 = vsyncpa [#allocation4], 1 }

// kernel: tpu_custom_call.1
= control target key start
LH: loop header
LB: loop body
LE: loop exit
PB: predicated region body
PF: predicated region fallthrough
CT: control target
= control target key end

     0   :  { %12 = vsyncpa [#allocation3], 0  ;;  %s797_s0 = inlined_call_operand.hbm [shape: f32[8,8], index: 0, kind: input, shape index: {}]   ;;  %s798_s1 = inlined_call_operand.hbm [shape: f32[8,128], index: 1, kind: input, shape index: {}]   ;;  %s799_s2 = inlined_call_operand.vmem [shape: f32[1,128], index: 2, kind: input, shape index: {}]   ;;  %s800_s3 = inlined_call_operand.hbm [shape: f32[128,128], index: 3, kind: input, shape index: {}]   ;;  %s801_s4 = inlined_call_operand.vmem [shape: f32[1,128], index: 4, kind: input, shape index: {}]   ;;  %s802_s5 = inlined_call_operand.hbm [shape: f32[128,128], index: 5, kind: input, shape index: {}]   ;;  %s803_s6 = inlined_call_operand.vmem [shape: f32[1,128], index: 6, kind: input, shape index: {}]   ;;  %s804_s7 = inlined_call_operand.hbm [shape: f32[8,5], index: 7, kind: output, shape index: {}]  }
   0x1   :  { %13 = vsyncpa [#allocation6], 0 }
   0x2   :  { %14 = vsyncpa [#allocation9], 0 }
   0x3   :  { %15 = vsyncpa [#allocation4], 0  ;;  %s659_s24 = smov [#allocation5]   ;;  %s660_s26 = smov [#allocation2]  }
   0x4   :  { %s32_s25 = sshll.u32 %s659_s24, 4  ;;  %s22_s27 = sshll.u32 %s660_s26, 4  ;;  %s33_s25 = int_to_ptr.vmem [resolvable:$true] %s32_s25  ;;  %s23_s27 = int_to_ptr.vmem [resolvable:$true] %s22_s27 }
   0x5   :  { %s541_s30 = scalar_lea.hbm %s798_s1, 128 }
   0x6   :  { %p542_p0 = scmp.ne.s32.totalorder %s798_s1, %s541_s30  ;;  %p545_p1 = scmp.lt.u32.totalorder %s541_s30, %s798_s1 }
   0x8   :  { %p547_p2 = pnand %p545_p1, %p542_p0 }
   0xa   :  { %550 = shalt.err (!%p547_p2)
}
   0xb   :  { %s551_s12 = scalar_lea.vmem %s33_s25, 128  ;;  %p556_p4 = scmp.lt.s32.totalorder %s33_s25, %s33_s25 }
   0xc   :  { %p552_p3 = scmp.ne.s32.totalorder %s33_s25, %s551_s12  ;;  %p557_p5 = scmp.lt.s32.totalorder %s551_s12, %s551_s12 }
   0xe   :  { %p558_p6 = por %p557_p5, %p556_p4 }
  0x10   :  { %p559_p7 = pnand %p558_p6, %p552_p3 }
  0x12   :  { %562 = shalt.err (!%p559_p7)
}
  0x13   :  { %35 = dma.hbm_to_vmem [thread:$0]  %s798_s1, 128, %s33_s25, [#allocation6]  }
  0x14   :  { %s563_s17 = scalar_lea.hbm %s797_s0, 128 }
  0x15   :  { %p564_p8 = scmp.ne.s32.totalorder %s797_s0, %s563_s17  ;;  %p567_p9 = scmp.lt.u32.totalorder %s563_s17, %s797_s0 }
  0x17   :  { %p569_p10 = pnand %p567_p9, %p564_p8 }
  0x19   :  { %572 = shalt.err (!%p569_p10)
}
  0x1a   :  { %s573_s22 = scalar_lea.vmem %s23_s27, 128  ;;  %p578_p12 = scmp.lt.s32.totalorder %s23_s27, %s23_s27 }
  0x1b   :  { %p574_p11 = scmp.ne.s32.totalorder %s23_s27, %s573_s22  ;;  %p579_p13 = scmp.lt.s32.totalorder %s573_s22, %s573_s22 }
  0x1d   :  { %p580_p0 = por %p579_p13, %p578_p12 }
  0x1f   :  { %p581_p1 = pnand %p580_p0, %p574_p11 }
  0x21   :  { %584 = shalt.err (!%p581_p1)
}
  0x22   :  { %25 = dma.hbm_to_vmem [thread:$0]  %s797_s0, 128, %s23_s27, [#allocation3]  }
  0x23   :  { %s661_s24 = smov [#allocation7]   ;;  %s585_s29 = scalar_lea.hbm %s800_s3, 2048 }
  0x24   :  { %s43_s25 = sshll.u32 %s661_s24, 4  ;;  %p586_p2 = scmp.ne.s32.totalorder %s800_s3, %s585_s29  ;;  %s44_s25 = int_to_ptr.vmem [resolvable:$true] %s43_s25 }
  0x25   :  { %p589_p3 = scmp.lt.u32.totalorder %s585_s29, %s800_s3 }
  0x27   :  { %p591_p4 = pnand %p589_p3, %p586_p2 }
  0x29   :  { %594 = shalt.err (!%p591_p4)
}
  0x2a   :  { %s595_s11 = scalar_lea.vmem %s44_s25, 2048  ;;  %p600_p6 = scmp.lt.s32.totalorder %s44_s25, %s44_s25 }
  0x2b   :  { %p596_p5 = scmp.ne.s32.totalorder %s44_s25, %s595_s11  ;;  %p601_p7 = scmp.lt.s32.totalorder %s595_s11, %s595_s11 }
  0x2d   :  { %p602_p8 = por %p601_p7, %p600_p6 }
  0x2f   :  { %p603_p9 = pnand %p602_p8, %p596_p5 }
  0x31   :  { %606 = shalt.err (!%p603_p9)
}
  0x32   :  { %s662_s0 = smov 128   ;;  %s663_s27 = smov 8  }
  0x33   :  { %49 = dma.hbm_to_vmem [thread:$0]  %s800_s3, 2048, %s44_s25, [#allocation6], %s662_s0, %s662_s0, %s663_s27  }
  0x34   :  { %s664_s14 = smov [#allocation8]   ;;  %s607_s18 = scalar_lea.hbm %s802_s5, 2048 }
  0x35   :  { %s57_s15 = sshll.u32 %s664_s14, 4  ;;  %p608_p10 = scmp.ne.s32.totalorder %s802_s5, %s607_s18  ;;  %s58_s15 = int_to_ptr.vmem [resolvable:$true] %s57_s15 }
  0x36   :  { %p611_p11 = scmp.lt.u32.totalorder %s607_s18, %s802_s5 }
  0x38   :  { %p613_p12 = pnand %p611_p11, %p608_p10 }
  0x3a   :  { %616 = shalt.err (!%p613_p12)
}
  0x3b   :  { %s617_s1 = scalar_lea.vmem %s58_s15, 2048  ;;  %p622_p0 = scmp.lt.s32.totalorder %s58_s15, %s58_s15 }
  0x3c   :  { %p618_p13 = scmp.ne.s32.totalorder %s58_s15, %s617_s1  ;;  %p623_p1 = scmp.lt.s32.totalorder %s617_s1, %s617_s1 }
  0x3e   :  { %p624_p2 = por %p623_p1, %p622_p0 }
  0x40   :  { %p625_p3 = pnand %p624_p2, %p618_p13 }
  0x42   :  { %628 = shalt.err (!%p625_p3)
}
  0x43   :  { %63 = dma.hbm_to_vmem [thread:$0]  %s802_s5, 2048, %s58_s15, [#allocation9], %s662_s0, %s662_s0, %s663_s27  }
  0x44   :  { %651 = dma.done.wait [#allocation3], 128  }
  0x45   :  { %652 = vsyncadd [#allocation3], 4294967168 }
  0x46   :  { %653 = dma.done.wait [#allocation6], 2176  }
  0x47   :  { %654 = vsyncadd [#allocation6], 4294965120 }
  0x48   :  { %655 = dma.done.wait [#allocation9], 2048  }
  0x49   :  { %656 = vsyncadd [#allocation9], 4294965248  ;;  %v665_v0 = vmov 0.0   ;;  %vm666_vm0 = vmmov 0   ;;  %v667_v1 = vmov 0.0|0.0   ;;  %vm87_vm1 = vcmask 64512  }
  0x4a   :  { %408 = vmatprep.subr.mxu0 %v665_v0  ;;  %410 = vmatprep.mubr.msk.f32.mxu0 %vm666_vm0, %v665_v0  ;;  %v79_v2 = vld [vmem:[#allocation5] sm:$0xff]  ;;  %v78_v3 = vld [vmem:[#allocation2] sm:$0xff]  ;;  %v162_v4 = vld [vmem:[#allocation7] sm:$0xff]  ;;  %s668_s29 = smov [#allocation10]   ;;  %vm349_vm2 = vcmask 39936  }
  0x4b   :  { %483 = vmatprep.subr.bf16.mxu1 %v667_v1  ;;  %445 = vmatprep.mubr.msk.f32.mxu1 %vm666_vm0, %v665_v0  ;;  %v163_v5 = vld [vmem:[#allocation7 + $0x8] sm:$0xff]  ;;  %v164_v6 = vld [vmem:[#allocation7 + $0x10] sm:$0xff]  ;;  %v165_v7 = vld [vmem:[#allocation7 + $0x18] sm:$0xff]  ;;  %s357_s30 = sshll.u32 %s668_s29, 4  ;;  %s358_s30 = int_to_ptr.vmem [resolvable:$true] %s357_s30 }
  0x4c   :  { %409 = vmatpush3.msra.mxu0 %v79_v2  ;;  %v484_v8 = vpack.c.bf16 %v163_v5, %v162_v4  ;;  %v487_v9 = vpack.c.bf16 %v165_v7, %v164_v6  ;;  %v166_v10 = vld [vmem:[#allocation7 + $0x20] sm:$0xff]  ;;  %v167_v11 = vld [vmem:[#allocation7 + $0x28] sm:$0xff]  ;;  %v168_v13 = vld [vmem:[#allocation7 + $0x30] sm:$0xff]  ;;  %s629_s8 = scalar_lea.vmem %s358_s30, 128  ;;  %p634_p5 = scmp.lt.s32.totalorder %s358_s30, %s358_s30 }
  0x4d   :  { %411 = vmatmul.mubr.msk.f32.vlgmr.msra.gmra.mrb[0].mxu0 %vm87_vm1, %v78_v3  ;;  %507 = vmatprep.subr.bf16.mxu0 %v667_v1  ;;  %v490_v12 = vpack.c.bf16 %v167_v11, %v166_v10  ;;  %v169_v14 = vld [vmem:[#allocation7 + $0x38] sm:$0xff]  ;;  %v170_v16 = vld [vmem:[#allocation7 + $0x40] sm:$0xff]  ;;  %v171_v17 = vld [vmem:[#allocation7 + $0x48] sm:$0xff]  ;;  %p630_p4 = scmp.ne.s32.totalorder %s358_s30, %s629_s8  ;;  %p635_p6 = scmp.lt.s32.totalorder %s629_s8, %s629_s8 }
  0x4e   :  { %480 = vmatprep.mubr.msk.f32.mxu0 %vm666_vm0, %v665_v0  ;;  %485 = vmatpush3.bf16.msra.mxu1 %v484_v8  ;;  %v493_v15 = vpack.c.bf16 %v169_v14, %v168_v13  ;;  %v496_v18 = vpack.c.bf16 %v171_v17, %v170_v16  ;;  %v172_v19 = vld [vmem:[#allocation7 + $0x50] sm:$0xff]  ;;  %v173_v20 = vld [vmem:[#allocation7 + $0x58] sm:$0xff]  ;;  %v174_v22 = vld [vmem:[#allocation7 + $0x60] sm:$0xff] }
  0x4f   :  { %486 = vmatprep.subr.bf16.mxu1 %v667_v1  ;;  %v499_v21 = vpack.c.bf16 %v173_v20, %v172_v19  ;;  %v175_v23 = vld [vmem:[#allocation7 + $0x68] sm:$0xff]  ;;  %v176_v25 = vld [vmem:[#allocation7 + $0x70] sm:$0xff]  ;;  %v177_v26 = vld [vmem:[#allocation7 + $0x78] sm:$0xff]  ;;  %p636_p7 = por %p635_p6, %p634_p5 }
  0x50   :  { %v502_v24 = vpack.c.bf16 %v175_v23, %v174_v22  ;;  %v505_v27 = vpack.c.bf16 %v177_v26, %v176_v25  ;;  %v256_v28 = vld [vmem:[#allocation8] sm:$0xff]  ;;  %v257_v29 = vld [vmem:[#allocation8 + $0x8] sm:$0xff]  ;;  %v258_v30 = vld [vmem:[#allocation8 + $0x10] sm:$0xff] }
  0x51   :  { %v508_v31 = vpack.c.bf16 %v257_v29, %v256_v28  ;;  %v259_v32 = vld [vmem:[#allocation8 + $0x18] sm:$0xff]  ;;  %v260_v34 = vld [vmem:[#allocation8 + $0x20] sm:$0xff]  ;;  %v261_v35 = vld [vmem:[#allocation8 + $0x28] sm:$0xff]  ;;  %p637_p8 = pnand %p636_p7, %p630_p4 }
  0x52   :  { %488 = vmatpush3.bf16.msra.mxu1 %v487_v9  ;;  %v511_v33 = vpack.c.bf16 %v259_v32, %v258_v30  ;;  %v514_v36 = vpack.c.bf16 %v261_v35, %v260_v34  ;;  %v262_v37 = vld [vmem:[#allocation8 + $0x30] sm:$0xff]  ;;  %v263_v38 = vld [vmem:[#allocation8 + $0x38] sm:$0xff]  ;;  %v264_v40 = vld [vmem:[#allocation8 + $0x40] sm:$0xff] }
  0x53   :  { %489 = vmatprep.subr.bf16.mxu1 %v667_v1  ;;  %509 = vmatpush3.bf16.msra.mxu0 %v508_v31  ;;  %v517_v39 = vpack.c.bf16 %v263_v38, %v262_v37  ;;  %v265_v41 = vld [vmem:[#allocation8 + $0x48] sm:$0xff]  ;;  %v266_v43 = vld [vmem:[#allocation8 + $0x50] sm:$0xff]  ;;  %v267_v44 = vld [vmem:[#allocation8 + $0x58] sm:$0xff] }
  0x54   :  { %510 = vmatprep.subr.bf16.mxu0 %v667_v1  ;;  %v520_v42 = vpack.c.bf16 %v265_v41, %v264_v40  ;;  %v523_v45 = vpack.c.bf16 %v267_v44, %v266_v43  ;;  %v268_v46 = vld [vmem:[#allocation8 + $0x60] sm:$0xff]  ;;  %v269_v47 = vld [vmem:[#allocation8 + $0x68] sm:$0xff]  ;;  %v368_v49 = vld [vmem:[%s799_s2] ss:$0 sm:$0xff] }
  0x55   :  { %v526_v48 = vpack.c.bf16 %v269_v47, %v268_v46  ;;  %v270_v54 = vld [vmem:[#allocation8 + $0x70] sm:$0xff]  ;;  %v271_v55 = vld [vmem:[#allocation8 + $0x78] sm:$0xff] }
  0x56   :  { %491 = vmatpush3.bf16.msra.mxu1 %v490_v12  ;;  %v529_v56 = vpack.c.bf16 %v271_v55, %v270_v54  ;;  %v370_v57 = vld [vmem:[%s801_s4] ss:$0 sm:$0xff] }
  0x57   :  { %492 = vmatprep.subr.bf16.mxu1 %v667_v1  ;;  %512 = vmatpush3.bf16.msra.mxu0 %v511_v33  ;;  %v371_v62 = vld [vmem:[%s803_s6] ss:$0 sm:$0xff] }
  0x58   :  { %513 = vmatprep.subr.bf16.mxu0 %v667_v1 }
  0x5a   :  { %494 = vmatpush3.bf16.msra.mxu1 %v493_v15 }
  0x5b   :  { %495 = vmatprep.subr.bf16.mxu1 %v667_v1  ;;  %515 = vmatpush3.bf16.msra.mxu0 %v514_v36 }
  0x5c   :  { %516 = vmatprep.subr.bf16.mxu0 %v667_v1 }
  0x5e   :  { %497 = vmatpush3.bf16.msra.mxu1 %v496_v18 }
  0x5f   :  { %498 = vmatprep.subr.bf16.mxu1 %v667_v1  ;;  %518 = vmatpush3.bf16.msra.mxu0 %v517_v39 }
  0x60   :  { %519 = vmatprep.subr.bf16.mxu0 %v667_v1 }
  0x62   :  { %500 = vmatpush3.bf16.msra.mxu1 %v499_v21 }
  0x63   :  { %501 = vmatprep.subr.bf16.mxu1 %v667_v1  ;;  %521 = vmatpush3.bf16.msra.mxu0 %v520_v42 }
  0x64   :  { %522 = vmatprep.subr.bf16.mxu0 %v667_v1 }
  0x66   :  { %503 = vmatpush3.bf16.msra.mxu1 %v502_v24 }
  0x67   :  { %504 = vmatprep.subr.bf16.mxu1 %v667_v1  ;;  %524 = vmatpush3.bf16.msra.mxu0 %v523_v45 }
  0x68   :  { %525 = vmatprep.subr.bf16.mxu0 %v667_v1 }
  0x6a   :  { %506 = vmatpush3.bf16.msra.mxu1 %v505_v27 }
  0x6b   :  { %527 = vmatpush3.bf16.msra.mxu0 %v526_v48 }
  0x6c   :  { %528 = vmatprep.subr.bf16.mxu0 %v667_v1 }
  0x6f   :  { %530 = vmatpush3.bf16.msra.mxu0 %v529_v56 }
 0x120   :  { %v157_v50 = vpop.f32.mrb[0].mxu0 }
 0x121   :  { %v158_v51 = vadd.f32 %v368_v49, %v157_v50  ;;  %v412_v52 = vpop.f32.mrb[1].mxu0 }
 0x123   :  { %v161_v53 = vmax.f32 %v158_v51, 0.0 }
 0x125   :  { %446 = vmatmul.mubr.f32.vlgmr.msra.gmra.mrb[0].mxu1 %v161_v53 }
 0x1f8   :  { %v251_v58 = vpop.f32.mrb[0].mxu1 }
 0x1f9   :  { %v252_v59 = vadd.f32 %v370_v57, %v251_v58  ;;  %v447_v60 = vpop.f32.mrb[1].mxu1 }
 0x1fb   :  { %v255_v61 = vmax.f32 %v252_v59, 0.0 }
 0x1fd   :  { %481 = vmatmul.mubr.f32.vlgmr.msra.gmra.mrb[2].mxu0 %v255_v61 }
 0x2d0   :  { %v345_v63 = vpop.f32.mrb[2].mxu0 }
 0x2d1   :  { %v346_v0 = vadd.f32 %v371_v62, %v345_v63  ;;  %v482_v1 = vpop.f32.mrb[3].mxu0 }
 0x2d3   :  { %350 = vst.msk [vmem:[#allocation10] sm:$0xff] %vm349_vm2, %v346_v0 }
 0x2d4   :  { %640 = shalt.err (!%p637_p8)
}
 0x2d5   :  { %s641_s10 = scalar_lea.hbm %s804_s7, 128 }
 0x2d6   :  { %p642_p9 = scmp.ne.s32.totalorder %s804_s7, %s641_s10  ;;  %p645_p10 = scmp.lt.u32.totalorder %s641_s10, %s804_s7 }
 0x2d8   :  { %p647_p11 = pnand %p645_p10, %p642_p9 }
 0x2da   :  { %650 = shalt.err (!%p647_p11)
}
 0x2db   :  { %360 = dma.vmem_to_hbm [thread:$0]  %s358_s30, 128, %s804_s7, [#allocation4]  }
 0x2dc   :  { %657 = dma.done.wait [#allocation4], 128  }
 0x2dd   :  { %658 = vsyncadd [#allocation4], 4294967168 }
 0x2de   :  { %364 = vsyncpa [#allocation3], 1 }
 0x2df   :  { %365 = vsyncpa [#allocation6], 1 }
 0x2e0   :  { %366 = vsyncpa [#allocation9], 1 }
 0x2e1   :  { %367 = vsyncpa [#allocation4], 1 }

</bundles_post_ra>
